<compile_context>
chip_gen: v7x
topology: tpu7x:2x2x1
jax: 0.10.0
libtpu: 0.0.40
codegen_flags: <defaults>
</compile_context>

<pallas_src>
import math
from functools import partial

import jax
import jax.numpy as jnp
from jax.experimental import pallas as pl
from jax.experimental.pallas import tpu as pltpu


# ---------------------------------------------------------------------------
# Kernel 1: fused QKV projection, lane-dense (B, T, D) outputs.
# ---------------------------------------------------------------------------
def _qkv_proj_kernel(x_ref, wq_ref, wk_ref, wv_ref, bq_ref, bk_ref, bv_ref,
                     q_ref, k_ref, v_ref):
    x = x_ref[0]                                            # (block_t, D) bf16
    q_ref[0] = (jnp.dot(x, wq_ref[...], preferred_element_type=jnp.float32)
                + bq_ref[...]).astype(q_ref.dtype)
    k_ref[0] = (jnp.dot(x, wk_ref[...], preferred_element_type=jnp.float32)
                + bk_ref[...]).astype(k_ref.dtype)
    v_ref[0] = (jnp.dot(x, wv_ref[...], preferred_element_type=jnp.float32)
                + bv_ref[...]).astype(v_ref.dtype)


# ---------------------------------------------------------------------------
# Kernel 2: flash attention over lower-triangular blocks + fused out-proj.
# ---------------------------------------------------------------------------
def _flash_attn_kernel(qi_map_ref, ki_map_ref,                 # scalar prefetch
                       q_ref, k_ref, v_ref, wo_ref, bo_ref,    # inputs
                       o_ref,                                   # output
                       m_sc, l_sc, acc_sc,                      # scratch
                       *, num_heads, d_k, block_q, block_k):
    step = pl.program_id(1)
    qi = qi_map_ref[step]
    ki = ki_map_ref[step]
    # Last (diagonal-containing) KV block for this q block — only it is masked
    # and it is also the finalize step.
    k_last = ((qi + 1) * block_q - 1) // block_k

    @pl.when(ki == 0)
    def _init():
        m_sc[...] = jnp.full_like(m_sc, -jnp.inf)
        l_sc[...] = jnp.zeros_like(l_sc)
        acc_sc[...] = jnp.zeros_like(acc_sc)

    q = q_ref[0]        # (block_q, D) bf16, 1/sqrt(d_k) pre-folded into Wq
    k = k_ref[0]        # (block_k, D) bf16
    v = v_ref[0]        # (block_k, D) bf16

    def update(masked):
        if masked:
            row = qi * block_q + jax.lax.broadcasted_iota(
                jnp.int32, (block_q, block_k), 0)
            col = ki * block_k + jax.lax.broadcasted_iota(
                jnp.int32, (block_q, block_k), 1)
            keep = col <= row
        for h in range(num_heads):                 # static unroll; static slices
            sl = slice(h * d_k, (h + 1) * d_k)
            # q_h @ k_h^T via dimension numbers (no in-kernel transpose).
            s = jax.lax.dot_general(q[:, sl], k[:, sl],
                                    (((1,), (1,)), ((), ())),
                                    preferred_element_type=jnp.float32)
            if masked:
                s = jnp.where(keep, s, -jnp.inf)
            m_prev = m_sc[h]                                       # (bq, 1) f32
            m_new = jnp.maximum(m_prev, jnp.max(s, axis=-1, keepdims=True))
            alpha = jnp.exp(m_prev - m_new)
            p = jnp.exp(s - m_new)
            l_sc[h] = alpha * l_sc[h] + jnp.sum(p, axis=-1, keepdims=True)
            acc_sc[:, sl] = alpha * acc_sc[:, sl] + jnp.dot(
                p.astype(v.dtype), v[:, sl], preferred_element_type=jnp.float32)
            m_sc[h] = m_new

    # Interior (strictly below the diagonal) blocks: no mask work at all.
    @pl.when(ki < k_last)
    def _interior():
        update(masked=False)

    # Diagonal block: masked update, then deferred normalization + output
    # projection fused as a single K=D matmul (head concat is implicit in the
    # lane-dense (block_q, D) accumulator layout).
    @pl.when(ki == k_last)
    def _diag_and_finalize():
        update(masked=True)
        for h in range(num_heads):
            sl = slice(h * d_k, (h + 1) * d_k)
            acc_sc[:, sl] = acc_sc[:, sl] * pl.reciprocal(l_sc[h], approx=True)
        y = acc_sc[...].astype(wo_ref.dtype)                   # (block_q, D) bf16
        out = jnp.dot(y, wo_ref[...],
                      preferred_element_type=jnp.float32) + bo_ref[...]
        o_ref[0] = out.astype(o_ref.dtype)


# ---------------------------------------------------------------------------
# Wrapper
# ---------------------------------------------------------------------------
def causal_mhsa(x, params, num_heads, *, block_q=128, block_k=128, block_t=128,
                compute_dtype=jnp.bfloat16, out_dtype=None):
    """x: [B, T, D] f32.  params: (in,out)-layout weights (D,D), biases (D,)."""
    B, T, D = x.shape
    if D % num_heads:
        raise ValueError("d_model must be divisible by num_heads")
    d_k = D // num_heads
    out_dtype = out_dtype or x.dtype
    f32 = jnp.float32

    block_t = min(block_t, T)
    block_q = min(block_q, T)
    block_k = min(block_k, T)
    assert T % block_t == 0 and T % block_q == 0 and T % block_k == 0
    assert block_k % block_q == 0, \
        "diagonal-only masking assumes block_k is a multiple of block_q"

    scale = 1.0 / math.sqrt(d_k)

    # Fold 1/sqrt(d_k) into Wq/bq so neither kernel scales the score tensor.
    wq = (params["wq"].astype(f32) * scale).astype(compute_dtype)
    wk = params["wk"].astype(compute_dtype)
    wv = params["wv"].astype(compute_dtype)
    wo = params["wo"].astype(compute_dtype)
    bq = (params["bq"].astype(f32) * scale).reshape(1, D)
    bk = params["bk"].astype(f32).reshape(1, D)
    bv = params["bv"].astype(f32).reshape(1, D)
    bo = params["bo"].astype(f32).reshape(1, D)
    x_c = x.astype(compute_dtype)

    # ---- Kernel 1: QKV projection -> q, k, v in lane-dense (B, T, D) bf16 ----
    num_t = T // block_t
    qkv_shape = jax.ShapeDtypeStruct((B, T, D), compute_dtype)
    x_spec = pl.BlockSpec((1, block_t, D), lambda b, t: (b, t, 0))
    w_spec = pl.BlockSpec((D, D), lambda b, t: (0, 0))        # fetched once
    b_spec = pl.BlockSpec((1, D), lambda b, t: (0, 0))
    o_spec = pl.BlockSpec((1, block_t, D), lambda b, t: (b, t, 0))

    k1_cost = pl.CostEstimate(
        flops=6 * B * T * D * D,
        transcendentals=0,
        bytes_accessed=4 * B * T * D * 2 + 3 * D * D * 2 + 3 * D * 4)

    q, k, v = pl.pallas_call(
        _qkv_proj_kernel,
        out_shape=(qkv_shape, qkv_shape, qkv_shape),
        grid_spec=pltpu.PrefetchScalarGridSpec(
            num_scalar_prefetch=0,
            grid=(B, num_t),
            in_specs=[x_spec, w_spec, w_spec, w_spec, b_spec, b_spec, b_spec],
            out_specs=(o_spec, o_spec, o_spec),
        ),
        compiler_params=pltpu.CompilerParams(
            dimension_semantics=("parallel", "parallel")),
        cost_estimate=k1_cost,
    )(x_c, wq, wk, wv, bq, bk, bv)

    # ---- Kernel 2: flash attention + fused output projection ----
    # Flattened lower-triangular (qi, ki) schedule -> no dead grid steps and
    # no dead K/V DMAs above the causal diagonal.
    num_q = T // block_q
    qi_list, ki_list = [], []
    for qi in range(num_q):
        last = ((qi + 1) * block_q - 1) // block_k
        for ki in range(last + 1):
            qi_list.append(qi)
            ki_list.append(ki)
    steps = len(qi_list)
    qi_map = jnp.asarray(qi_list, jnp.int32)
    ki_map = jnp.asarray(ki_list, jnp.int32)

    q_spec = pl.BlockSpec((1, block_q, D), lambda b, i, qm, km: (b, qm[i], 0))
    kv_spec = pl.BlockSpec((1, block_k, D), lambda b, i, qm, km: (b, km[i], 0))
    wo_spec = pl.BlockSpec((D, D), lambda b, i, qm, km: (0, 0))
    bo_spec = pl.BlockSpec((1, D), lambda b, i, qm, km: (0, 0))
    out_spec = pl.BlockSpec((1, block_q, D), lambda b, i, qm, km: (b, qm[i], 0))

    out_bytes = jnp.dtype(out_dtype).itemsize
    k2_cost = pl.CostEstimate(
        flops=B * (steps * 4 * block_q * block_k * D + num_q * 2 * block_q * D * D),
        transcendentals=B * steps * num_heads * block_q * block_k,
        bytes_accessed=(B * (T * D * 2 + steps * 2 * block_k * D * 2
                             + T * D * out_bytes) + D * D * 2 + D * 4))

    out = pl.pallas_call(
        partial(_flash_attn_kernel, num_heads=num_heads, d_k=d_k,
                block_q=block_q, block_k=block_k),
        out_shape=jax.ShapeDtypeStruct((B, T, D), out_dtype),
        grid_spec=pltpu.PrefetchScalarGridSpec(
            num_scalar_prefetch=2,
            grid=(B, steps),
            in_specs=[q_spec, kv_spec, kv_spec, wo_spec, bo_spec],
            out_specs=out_spec,
            scratch_shapes=[
                pltpu.VMEM((num_heads, block_q, 1), jnp.float32),  # running max m
                pltpu.VMEM((num_heads, block_q, 1), jnp.float32),  # running sum l
                pltpu.VMEM((block_q, D), jnp.float32),             # lane-dense acc
            ],
        ),
        compiler_params=pltpu.CompilerParams(
            dimension_semantics=("parallel", "arbitrary")),
        cost_estimate=k2_cost,
    )(qi_map, ki_map, q, k, v, wo, bo)
    return out


# ---------------------------------------------------------------------------
# Parameters / reference
# ---------------------------------------------------------------------------
def init_params(key, d_model):
    """nn.Linear-style init; weights stored as (in, out), biases as (out,)."""
    bound = 1.0 / math.sqrt(d_model)
    ks = jax.random.split(key, 8)

    def u(k, shape):
        return jax.random.uniform(k, shape, jnp.float32, -bound, bound)

    return {
        "wq": u(ks[0], (d_model, d_model)), "bq": u(ks[1], (d_model,)),
        "wk": u(ks[2], (d_model, d_model)), "bk": u(ks[3], (d_model,)),
        "wv": u(ks[4], (d_model, d_model)), "bv": u(ks[5], (d_model,)),
        "wo": u(ks[6], (d_model, d_model)), "bo": u(ks[7], (d_model,)),
    }


def reference_mhsa(x, params, num_heads):
    """Pure-JAX reference mirroring the PyTorch forward (dropout p=0)."""
    B, T, D = x.shape
    d_k = D // num_heads
    q = x @ params["wq"] + params["bq"]
    k = x @ params["wk"] + params["bk"]
    v = x @ params["wv"] + params["bv"]

    def split(t):                 # (B, T, D) -> (B, H, T, d_k)
        return t.reshape(B, T, num_heads, d_k).transpose(0, 2, 1, 3)

    q, k, v = split(q), split(k), split(v)
    scores = jnp.einsum("bhqd,bhkd->bhqk", q, k) / math.sqrt(d_k)
    mask = jnp.tril(jnp.ones((T, T), bool))
    scores = jnp.where(mask, scores, -jnp.inf)
    probs = jax.nn.softmax(scores, axis=-1)
    y = jnp.einsum("bhqk,bhkd->bhqd", probs, v)
    y = y.transpose(0, 2, 1, 3).reshape(B, T, D)
    return y @ params["wo"] + params["bo"]


if __name__ == "__main__":
    # Small but aligned demo: lane-dense D (multiple of 128) and two 128-row
    # query blocks so init / interior (unmasked) / diagonal (masked+finalize)
    # paths of the flattened lower-triangular schedule are all exercised.
    B, T, D, H = 2, 256, 128, 4

    key = jax.random.PRNGKey(0)
    kx, kp = jax.random.split(key)
    x = jax.random.normal(kx, (B, T, D), jnp.float32)
    params = init_params(kp, D)

    out = causal_mhsa(x, params, num_heads=H)
    out = jax.block_until_ready(out)

    # Compare against an f32 reference fed the same bf16-rounded MXU operands.
    rnd = lambda a: a.astype(jnp.bfloat16).astype(jnp.float32)
    params_r = {n: (rnd(p) if n.startswith("w") else p) for n, p in params.items()}
    ref = reference_mhsa(rnd(x), params_r, H)

    assert out.shape == (B, T, D)
    max_err = float(jnp.max(jnp.abs(out - ref)))
    assert jnp.allclose(out, ref, atol=2e-2, rtol=2e-2), \
        f"mismatch vs reference (max abs err = {max_err:.2e})"

    print("KERNEL_OK")
</pallas_src>

<mosaic_0001>
module attributes {stable_mosaic.version = 11 : i64} {
  func.func @_qkv_proj_kernel(%arg0: i32, %arg1: i32, %arg2: memref<1x128x128xbf16, #tpu.memory_space<vmem>>, %arg3: memref<128x128xbf16, #tpu.memory_space<vmem>>, %arg4: memref<128x128xbf16, #tpu.memory_space<vmem>>, %arg5: memref<128x128xbf16, #tpu.memory_space<vmem>>, %arg6: memref<1x128xf32, #tpu.memory_space<vmem>>, %arg7: memref<1x128xf32, #tpu.memory_space<vmem>>, %arg8: memref<1x128xf32, #tpu.memory_space<vmem>>, %arg9: memref<1x128x128xbf16, #tpu.memory_space<vmem>>, %arg10: memref<1x128x128xbf16, #tpu.memory_space<vmem>>, %arg11: memref<1x128x128xbf16, #tpu.memory_space<vmem>>) attributes {dimension_semantics = [#tpu.dimension_semantics<parallel>, #tpu.dimension_semantics<parallel>], iteration_bounds = array<i64: 2, 2>, scalar_prefetch = 0 : i64, scratch_operands = 0 : i64, tpu.core_type = #tpu.core_type<tc>, window_params = [{transform_indices = @transform_0, window_bounds = array<i64: 1, 128, 128>}, {pipeline_mode = #tpu.pipeline_mode<synchronous>, transform_indices = @transform_1, window_bounds = array<i64: 128, 128>}, {pipeline_mode = #tpu.pipeline_mode<synchronous>, transform_indices = @transform_2, window_bounds = array<i64: 128, 128>}, {pipeline_mode = #tpu.pipeline_mode<synchronous>, transform_indices = @transform_3, window_bounds = array<i64: 128, 128>}, {pipeline_mode = #tpu.pipeline_mode<synchronous>, transform_indices = @transform_4, window_bounds = array<i64: 1, 128>}, {pipeline_mode = #tpu.pipeline_mode<synchronous>, transform_indices = @transform_5, window_bounds = array<i64: 1, 128>}, {pipeline_mode = #tpu.pipeline_mode<synchronous>, transform_indices = @transform_6, window_bounds = array<i64: 1, 128>}, {transform_indices = @transform_7, window_bounds = array<i64: 1, 128, 128>}, {transform_indices = @transform_8, window_bounds = array<i64: 1, 128, 128>}, {transform_indices = @transform_9, window_bounds = array<i64: 1, 128, 128>}]} {
    %c0 = arith.constant 0 : index
    %c0_0 = arith.constant 0 : index
    %c0_1 = arith.constant 0 : index
    %0 = vector.load %arg2[%c0, %c0_0, %c0_1] : memref<1x128x128xbf16, #tpu.memory_space<vmem>>, vector<1x128x128xbf16>
    %1 = vector.shape_cast %0 : vector<1x128x128xbf16> to vector<128x128xbf16>
    %c0_2 = arith.constant 0 : index
    %c0_3 = arith.constant 0 : index
    %2 = vector.load %arg3[%c0_2, %c0_3] : memref<128x128xbf16, #tpu.memory_space<vmem>>, vector<128x128xbf16>
    %cst = arith.constant dense<0.000000e+00> : vector<128x128xf32>
    %3 = tpu.matmul %1, %2, %cst {dimension_numbers = #tpu.dot_dimension_numbers<[1], [0], [0], [1], [0, 0, 1, 1], [], []>} : vector<128x128xbf16>, vector<128x128xbf16>, vector<128x128xf32> -> vector<128x128xf32>
    %c0_4 = arith.constant 0 : index
    %c0_5 = arith.constant 0 : index
    %4 = vector.load %arg6[%c0_4, %c0_5] : memref<1x128xf32, #tpu.memory_space<vmem>>, vector<1x128xf32>
    %5 = vector.broadcast %4 : vector<1x128xf32> to vector<128x128xf32>
    %6 = arith.addf %3, %5 : vector<128x128xf32>
    %7 = arith.truncf %6 : vector<128x128xf32> to vector<128x128xbf16>
    %c0_6 = arith.constant 0 : index
    %c0_7 = arith.constant 0 : index
    %c0_8 = arith.constant 0 : index
    %8 = vector.load %arg9[%c0_6, %c0_7, %c0_8] : memref<1x128x128xbf16, #tpu.memory_space<vmem>>, vector<1x128x128xbf16>
    %9 = vector.shape_cast %8 : vector<1x128x128xbf16> to vector<128x128xbf16>
    %10 = vector.shape_cast %7 : vector<128x128xbf16> to vector<1x128x128xbf16>
    tpu.vector_store %arg9[%c0_6, %c0_7, %c0_8], %10 {strides = array<i32>} : memref<1x128x128xbf16, #tpu.memory_space<vmem>>, vector<1x128x128xbf16>,
    %c0_9 = arith.constant 0 : index
    %c0_10 = arith.constant 0 : index
    %11 = vector.load %arg4[%c0_9, %c0_10] : memref<128x128xbf16, #tpu.memory_space<vmem>>, vector<128x128xbf16>
    %cst_11 = arith.constant dense<0.000000e+00> : vector<128x128xf32>
    %12 = tpu.matmul %1, %11, %cst_11 {dimension_numbers = #tpu.dot_dimension_numbers<[1], [0], [0], [1], [0, 0, 1, 1], [], []>} : vector<128x128xbf16>, vector<128x128xbf16>, vector<128x128xf32> -> vector<128x128xf32>
    %c0_12 = arith.constant 0 : index
    %c0_13 = arith.constant 0 : index
    %13 = vector.load %arg7[%c0_12, %c0_13] : memref<1x128xf32, #tpu.memory_space<vmem>>, vector<1x128xf32>
    %14 = vector.broadcast %13 : vector<1x128xf32> to vector<128x128xf32>
    %15 = arith.addf %12, %14 : vector<128x128xf32>
    %16 = arith.truncf %15 : vector<128x128xf32> to vector<128x128xbf16>
    %c0_14 = arith.constant 0 : index
    %c0_15 = arith.constant 0 : index
    %c0_16 = arith.constant 0 : index
    %17 = vector.load %arg10[%c0_14, %c0_15, %c0_16] : memref<1x128x128xbf16, #tpu.memory_space<vmem>>, vector<1x128x128xbf16>
    %18 = vector.shape_cast %17 : vector<1x128x128xbf16> to vector<128x128xbf16>
    %19 = vector.shape_cast %16 : vector<128x128xbf16> to vector<1x128x128xbf16>
    tpu.vector_store %arg10[%c0_14, %c0_15, %c0_16], %19 {strides = array<i32>} : memref<1x128x128xbf16, #tpu.memory_space<vmem>>, vector<1x128x128xbf16>,
    %c0_17 = arith.constant 0 : index
    %c0_18 = arith.constant 0 : index
    %20 = vector.load %arg5[%c0_17, %c0_18] : memref<128x128xbf16, #tpu.memory_space<vmem>>, vector<128x128xbf16>
    %cst_19 = arith.constant dense<0.000000e+00> : vector<128x128xf32>
    %21 = tpu.matmul %1, %20, %cst_19 {dimension_numbers = #tpu.dot_dimension_numbers<[1], [0], [0], [1], [0, 0, 1, 1], [], []>} : vector<128x128xbf16>, vector<128x128xbf16>, vector<128x128xf32> -> vector<128x128xf32>
    %c0_20 = arith.constant 0 : index
    %c0_21 = arith.constant 0 : index
    %22 = vector.load %arg8[%c0_20, %c0_21] : memref<1x128xf32, #tpu.memory_space<vmem>>, vector<1x128xf32>
    %23 = vector.broadcast %22 : vector<1x128xf32> to vector<128x128xf32>
    %24 = arith.addf %21, %23 : vector<128x128xf32>
    %25 = arith.truncf %24 : vector<128x128xf32> to vector<128x128xbf16>
    %c0_22 = arith.constant 0 : index
    %c0_23 = arith.constant 0 : index
    %c0_24 = arith.constant 0 : index
    %26 = vector.load %arg11[%c0_22, %c0_23, %c0_24] : memref<1x128x128xbf16, #tpu.memory_space<vmem>>, vector<1x128x128xbf16>
    %27 = vector.shape_cast %26 : vector<1x128x128xbf16> to vector<128x128xbf16>
    %28 = vector.shape_cast %25 : vector<128x128xbf16> to vector<1x128x128xbf16>
    tpu.vector_store %arg11[%c0_22, %c0_23, %c0_24], %28 {strides = array<i32>} : memref<1x128x128xbf16, #tpu.memory_space<vmem>>, vector<1x128x128xbf16>,
    return
  }
  func.func @transform_0(%arg0: i32, %arg1: i32) -> (i32, i32, i32) {
    %c0_i32 = arith.constant 0 : i32
    %c0_i32_0 = arith.constant 0 : i32
    return %arg0, %arg1, %c0_i32 : i32, i32, i32
  }
  func.func @transform_1(%arg0: i32, %arg1: i32) -> (i32, i32) {
    %c0_i32 = arith.constant 0 : i32
    %c0_i32_0 = arith.constant 0 : i32
    %c0_i32_1 = arith.constant 0 : i32
    return %c0_i32, %c0_i32_0 : i32, i32
  }
  func.func @transform_2(%arg0: i32, %arg1: i32) -> (i32, i32) {
    %c0_i32 = arith.constant 0 : i32
    %c0_i32_0 = arith.constant 0 : i32
    %c0_i32_1 = arith.constant 0 : i32
    return %c0_i32, %c0_i32_0 : i32, i32
  }
  func.func @transform_3(%arg0: i32, %arg1: i32) -> (i32, i32) {
    %c0_i32 = arith.constant 0 : i32
    %c0_i32_0 = arith.constant 0 : i32
    %c0_i32_1 = arith.constant 0 : i32
    return %c0_i32, %c0_i32_0 : i32, i32
  }
  func.func @transform_4(%arg0: i32, %arg1: i32) -> (i32, i32) {
    %c0_i32 = arith.constant 0 : i32
    %c0_i32_0 = arith.constant 0 : i32
    %c0_i32_1 = arith.constant 0 : i32
    return %c0_i32, %c0_i32_0 : i32, i32
  }
  func.func @transform_5(%arg0: i32, %arg1: i32) -> (i32, i32) {
    %c0_i32 = arith.constant 0 : i32
    %c0_i32_0 = arith.constant 0 : i32
    %c0_i32_1 = arith.constant 0 : i32
    return %c0_i32, %c0_i32_0 : i32, i32
  }
  func.func @transform_6(%arg0: i32, %arg1: i32) -> (i32, i32) {
    %c0_i32 = arith.constant 0 : i32
    %c0_i32_0 = arith.constant 0 : i32
    %c0_i32_1 = arith.constant 0 : i32
    return %c0_i32, %c0_i32_0 : i32, i32
  }
  func.func @transform_7(%arg0: i32, %arg1: i32) -> (i32, i32, i32) {
    %c0_i32 = arith.constant 0 : i32
    %c0_i32_0 = arith.constant 0 : i32
    return %arg0, %arg1, %c0_i32 : i32, i32, i32
  }
  func.func @transform_8(%arg0: i32, %arg1: i32) -> (i32, i32, i32) {
    %c0_i32 = arith.constant 0 : i32
    %c0_i32_0 = arith.constant 0 : i32
    return %arg0, %arg1, %c0_i32 : i32, i32, i32
  }
  func.func @transform_9(%arg0: i32, %arg1: i32) -> (i32, i32, i32) {
    %c0_i32 = arith.constant 0 : i32
    %c0_i32_0 = arith.constant 0 : i32
    return %arg0, %arg1, %c0_i32 : i32, i32, i32
  }
}

</mosaic_0001>

<bundles_post_ra>
// kernel: tpu_custom_call.1
= control target key start
LH: loop header
LB: loop body
LE: loop exit
PB: predicated region body
PF: predicated region fallthrough
CT: control target
= control target key end

     0   :  { %s2987_s0 = inlined_call_operand.hbm [shape: bf16[2,256,128], index: 0, kind: input, shape index: {}]   ;;  %s2988_s1 = inlined_call_operand.hbm [shape: bf16[128,128], index: 1, kind: input, shape index: {}]   ;;  %s2989_s2 = inlined_call_operand.hbm [shape: bf16[128,128], index: 2, kind: input, shape index: {}]   ;;  %s2990_s3 = inlined_call_operand.hbm [shape: bf16[128,128], index: 3, kind: input, shape index: {}]   ;;  %s2991_s4 = inlined_call_operand.vmem [shape: f32[1,128], index: 4, kind: input, shape index: {}]   ;;  %s2992_s5 = inlined_call_operand.vmem [shape: f32[1,128], index: 5, kind: input, shape index: {}]   ;;  %s2993_s6 = inlined_call_operand.vmem [shape: f32[1,128], index: 6, kind: input, shape index: {}]   ;;  %s2994_s7 = inlined_call_operand.hbm [shape: bf16[2,256,128], index: 7, kind: output, shape index: {0}]   ;;  %s2995_s8 = inlined_call_operand.hbm [shape: bf16[2,256,128], index: 8, kind: output, shape index: {1}]   ;;  %s2996_s9 = inlined_call_operand.hbm [shape: bf16[2,256,128], index: 9, kind: output, shape index: {2}]  }
   0x1   :  { %3009 = sst [smem:[#allocation23_spill]] %s2988_s1 }
   0x2   :  { %3010 = sst [smem:[#allocation24_spill]] %s2989_s2 }
   0x3   :  { %3011 = sst [smem:[#allocation25_spill]] %s2990_s3 }
   0x4   :  { %3012 = sst [smem:[#allocation26_spill]] %s2993_s6 }
   0x5   :  { %3013 = sst [smem:[#allocation27_spill]] %s2994_s7 }
   0x6   :  { %3014 = sst [smem:[#allocation28_spill]] %s2995_s8 }
   0x7   :  { %3015 = sst [smem:[#allocation29_spill]] %s2996_s9 }
   0x8   :  { %15 = vsyncpa [#allocation3], 0 }
   0x9   :  { %17 = vsyncpa [#allocation3 + $0x1], 0 }
   0xa   :  { %18 = vsyncpa [#allocation6], 0 }
   0xb   :  { %19 = vsyncpa [#allocation9], 0 }
   0xc   :  { %20 = vsyncpa [#allocation4], 0 }
   0xd   :  { %22 = vsyncpa [#allocation4 + $0x1], 0 }
   0xe   :  { %23 = vsyncpa [#allocation12], 0 }
   0xf   :  { %25 = vsyncpa [#allocation12 + $0x1], 0  ;;  %s2459_s30 = smov 0   ;;  %s2461_s10 = smov 0  }
  0x10   :  { %s2463_s11 = smov 0   ;;  %s2465_s12 = smov 0  }
  0x11   :  { %s2467_s13 = smov 0   ;;  %s2469_s14 = smov 0  }
  0x12   :  { %s2471_s15 = smov 0   ;;  %s2473_s16 = smov 0  }
  0x13 LB: > { %3016 = sst [smem:[#allocation19_spill]] %s2368_s30  ;;  %s2500_s17 = sadd.s32 4294967295, %s2396_s16   ;;  %s2396_s16 = sphi %s2473_s16, %s31_s16   ;;  %s2392_s15 = sphi %s2471_s15, %s3056_s15   ;;  %s2388_s14 = sphi %s2469_s14, %s3055_s14   ;;  %s2384_s13 = sphi %s2467_s13, %s3054_s13   ;;  %s2380_s12 = sphi %s2465_s12, %s3053_s12   ;;  %s2376_s11 = sphi %s2463_s11, %s3052_s11   ;;  %s2372_s10 = sphi %s2461_s10, %s3051_s10   ;;  %s2368_s30 = sphi %s2459_s30, %s3050_s30  }
  0x14   : > { %3017 = sst [smem:[#allocation20_spill]] %s2384_s13  ;;  %s2997_s18 = sadd.s32 4294967294, %s2396_s16  }
  0x15   : > { %p65_p0 = scmp.ne.s32.totalorder %s2372_s10, %s2368_s30  ;;  %p3001_p1 = scmp.eq.s32.totalorder %s2500_s17, 0 }
  0x16   : > { %p223_p3 = scmp.eq.s32.totalorder %s2997_s18, 3  ;;  %p1498_p5 = scmp.ge.s32.totalorder %s2396_s16, 1 }
  0x17   : > { %p2511_p4 = por %p3001_p1, %p65_p0  ;;  %p286_p7 = scmp.lt.s32.totalorder %s2396_s16, 5 }
  0x18   : > { %p2516_p6 = por %p223_p3, %p65_p0  ;;  %s2398_s22 = smov [#allocation5]  }
  0x19   : > { %s3018_s19 = scalar_select %p2511_p4, 1, 0 }
  0x1a   : > { %s3019_s20 = scalar_select %p2516_p6, 1, 0 }
  0x1b   : > { %p2521_p8 = pnand %p1498_p5, %p286_p7  ;;  %s298_s23 = sshll.u32 %s2398_s22, 4  ;;  %s2525_s23 = int_to_ptr.vmem [resolvable:$true] %s298_s23 }
  0x1c   : > { %3020 = sst [smem:[#allocation21_spill]] %s3019_s20  ;;  %s2399_s25 = smov [#allocation7]  }
  0x1d   : > { %s3021_s21 = scalar_select %p2521_p8, 1, 0 }
  0x1e   : > { %p1981_p9 = pneg %p2521_p8  ;;  %s311_s26 = sshll.u32 %s2399_s25, 4  ;;  %s2535_s26 = int_to_ptr.vmem [resolvable:$true] %s311_s26 }
  0x1f   : > { %s2400_s27 = smov [#allocation8]   ;;  %s3023_s1 = sld [smem:[#allocation23_spill]] }
  0x20   : > { %p2531_p10 = pnand %p1981_p9, %p3001_p1  ;;  %s2537_s28 = sshll.u32 %s2400_s27, 4  ;;  %s325_s28 = int_to_ptr.vmem [resolvable:$true] %s2537_s28 }
  0x22   : > { %p2547_p12 = pneg %p2531_p10 }
  0x25   : > { %s2116_s22 = scalar_lea.hbm %s3023_s1, 1024 }
  0x26   : > { %p2117_p11 = scmp.ne.s32.totalorder %s3023_s1, %s2116_s22  ;;  %p2123_p3 = scmp.lt.u32.totalorder %s2116_s22, %s3023_s1 }
  0x28   : > { %p2119_p13 = pnand %p2547_p12, %p2117_p11 }
  0x2a   : > { %p2120_p0 = pneg %p2119_p13 }
  0x2c   : > { %p2125_p5 = pnand %p2123_p3, %p2120_p0 }
  0x2e   : > { %2128 = shalt.err (!%p2125_p5)
}
  0x2f   : > { %s2129_s30 = scalar_lea.vmem %s2525_s23, 1024  ;;  %p2137_p2 = scmp.lt.s32.totalorder %s2525_s23, %s2525_s23 }
  0x30   : > { %p2130_p7 = scmp.ne.s32.totalorder %s2525_s23, %s2129_s30  ;;  %p2138_p6 = scmp.lt.s32.totalorder %s2129_s30, %s2129_s30 }
  0x32   : > { %p2132_p9 = pnand %p2130_p7, %p2547_p12  ;;  %p2139_p11 = por %p2138_p6, %p2137_p2 }
  0x34   : > { %p2133_p1 = pneg %p2132_p9 }
  0x36   : > { %p2140_p13 = pnand %p2139_p11, %p2133_p1 }
  0x38   : > { %2143 = shalt.err (!%p2140_p13)
}
  0x39   : > { %s3006_s18 = smov 64   ;;  %s3007_s20 = smov 4  }
  0x3a   : > { %1984 = dma.hbm_to_vmem [thread:$0]  (!%p2531_p10), %s3023_s1, 1024, %s2525_s23, [#allocation6], %s3006_s18, %s3006_s18, %s3007_s20  }
  0x3b   : > { %s3025_s2 = sld [smem:[#allocation24_spill]] }
  0x41   : > { %s2144_s30 = scalar_lea.hbm %s3025_s2, 1024 }
  0x42   : > { %p2145_p1 = scmp.ne.s32.totalorder %s3025_s2, %s2144_s30  ;;  %p2151_p0 = scmp.lt.u32.totalorder %s2144_s30, %s3025_s2 }
  0x44   : > { %p2147_p2 = pnand %p2145_p1, %p2547_p12 }
  0x46   : > { %p2148_p6 = pneg %p2147_p2 }
  0x48   : > { %p2153_p3 = pnand %p2151_p0, %p2148_p6 }
  0x4a   : > { %2156 = shalt.err (!%p2153_p3)
}
  0x4b   : > { %s2157_s23 = scalar_lea.vmem %s2535_s26, 1024  ;;  %p2165_p11 = scmp.lt.s32.totalorder %s2535_s26, %s2535_s26 }
  0x4c   : > { %p2158_p5 = scmp.ne.s32.totalorder %s2535_s26, %s2157_s23  ;;  %p2166_p13 = scmp.lt.s32.totalorder %s2157_s23, %s2157_s23 }
  0x4e   : > { %p2160_p7 = pnand %p2158_p5, %p2547_p12  ;;  %p2167_p1 = por %p2166_p13, %p2165_p11 }
  0x50   : > { %p2161_p9 = pneg %p2160_p7 }
  0x52   : > { %p2168_p2 = pnand %p2167_p1, %p2161_p9 }
  0x54   : > { %2171 = shalt.err (!%p2168_p2)
}
  0x55   : > { %1987 = dma.hbm_to_vmem [thread:$0]  (!%p2531_p10), %s3025_s2, 1024, %s2535_s26, [#allocation6], %s3006_s18, %s3006_s18, %s3007_s20  }
  0x56   : > { %s3026_s3 = sld [smem:[#allocation25_spill]] }
  0x5c   : > { %s2172_s29 = scalar_lea.hbm %s3026_s3, 1024 }
  0x5d   : > { %p2173_p6 = scmp.ne.s32.totalorder %s3026_s3, %s2172_s29  ;;  %p2179_p5 = scmp.lt.u32.totalorder %s2172_s29, %s3026_s3 }
  0x5f   : > { %p2175_p0 = pnand %p2173_p6, %p2547_p12 }
  0x61   : > { %p2176_p3 = pneg %p2175_p0 }
  0x63   : > { %p2181_p7 = pnand %p2179_p5, %p2176_p3 }
  0x65   : > { %2184 = shalt.err (!%p2181_p7)
}
  0x66   : > { %s2185_s23 = scalar_lea.vmem %s325_s28, 1024  ;;  %p2193_p1 = scmp.lt.s32.totalorder %s325_s28, %s325_s28 }
  0x67   : > { %p2186_p9 = scmp.ne.s32.totalorder %s325_s28, %s2185_s23  ;;  %p2194_p2 = scmp.lt.s32.totalorder %s2185_s23, %s2185_s23 }
  0x69   : > { %p2188_p11 = pnand %p2186_p9, %p2547_p12  ;;  %p2195_p4 = por %p2194_p2, %p2193_p1 }
  0x6b   : > { %p2189_p13 = pneg %p2188_p11 }
  0x6d   : > { %p2196_p8 = pnand %p2195_p4, %p2189_p13 }
  0x6f   : > { %2199 = shalt.err (!%p2196_p8)
}
  0x70   : > { %1990 = dma.hbm_to_vmem [thread:$0]  (!%p2531_p10), %s3026_s3, 1024, %s325_s28, [#allocation9], %s3006_s18, %s3006_s18, %s3007_s20  }
  0x71   : > { %s40_s9 = sadd.s32 1, %s2388_s14  ;;  %s43_s24 = sadd.s32 1, %s2392_s15 }
  0x72   : > { %p41_p4 = scmp.ge.s32.totalorder %s40_s9, 2  ;;  %s52_s7 = sadd.s32 1, %s2376_s11 }
  0x73   : > { %p59_p8 = scmp.ne.s32.totalorder %s2376_s11, %s2372_s10  ;;  %p60_p12 = scmp.eq.s32.totalorder %s2396_s16, 0 }
  0x74   : > { %s3058_s9 = smov (%p41_p4, %s40_s9), 0  ;;  %s3060_s24 = smov (!%p41_p4, %s43_s24), %s2392_s15 }
  0x75   : > { %s48_s8 = ssub.s32 %s2388_s14, %s3058_s9  ;;  %p45_p6 = scmp.ge.s32.totalorder %s3060_s24, 2 }
  0x76   : > { %p3027_p0 = scmp.eq.s32.totalorder %s2500_s17, 3  ;;  %p2636_p10 = por %p60_p12, %p59_p8 }
  0x77   : > { %p2008_p5 = scmp.lt.s32.totalorder %s2396_s16, 4  ;;  %s3062_s24 = smov (%p45_p6, %s3060_s24), 0 }
  0x78   : > { %p2632_p3 = por %p3027_p0, %p59_p8  ;;  %3030 = sst [smem:[#allocation22_spill]] %s3062_s24 }
  0x79   : > { %s347_s29 = sand.u32 1, %s2376_s11   ;;  %s1504_s22 = sshll.u32 %s2388_s14, 4 }
  0x7a   : > { %s47_s25 = ssub.s32 %s2392_s15, %s3062_s24  ;;  %s1503_s30 = sshll.u32 %s347_s29, 6 }
  0x7b   : > { %s49_s27 = sor.u32 %s48_s8, %s47_s25  ;;  %s1505_s23 = sshll.u32 %s2392_s15, 5 }
  0x7c   : > { %p50_p7 = scmp.eq.s32.totalorder %s49_s27, 0  ;;  %s351_s26 = scalar_lea.vmem [#allocation2], %s1503_s30 }
  0x7d   : > { %s360_s6 = sshll.u32 %s351_s26, 4  ;;  %s357_s20 = sadd.s32 %s1505_s23, %s1504_s22  ;;  %s2651_s6 = int_to_ptr.vmem [resolvable:$true] %s360_s6 }
  0x7e   : > { %s2649_s18 = scalar_select %p50_p7, %s2376_s11, %s52_s7  }
  0x7f   : > { %s1506_s1 = sshll.u32 %s357_s20, 6  ;;  %p2657_p9 = pnand %p2008_p5, %p2636_p10 }
  0x80   : > { %s2664_s8 = scalar_lea.hbm %s2987_s0, %s1506_s1  ;;  %s2666_s7 = scalar_lea.sflag [#allocation3], %s347_s29 }
  0x81   : > { %s2200_s20 = scalar_lea.hbm %s2664_s8, 1024  ;;  %p2202_p13 = pneg %p2657_p9 }
  0x82   : > { %p2201_p11 = scmp.ne.s32.totalorder %s2664_s8, %s2200_s20  ;;  %s2205_s24 = scalar_lea.hbm %s2987_s0, 4096 }
  0x83   : > { %p2206_p4 = scmp.lt.u32.totalorder %s2664_s8, %s2987_s0  ;;  %p2207_p8 = scmp.lt.u32.totalorder %s2205_s24, %s2200_s20 }
  0x84   : > { %p2203_p1 = pnand %p2202_p13, %p2201_p11  ;;  %p2209_p6 = scmp.lt.u32.totalorder %s2200_s20, %s2664_s8 }
  0x85   : > { %p2208_p12 = por %p2207_p8, %p2206_p4 }
  0x86   : > { %p2204_p2 = pneg %p2203_p1 }
  0x87   : > { %p2210_p0 = por %p2209_p6, %p2208_p12 }
  0x89   : > { %p2211_p10 = pnand %p2210_p0, %p2204_p2 }
  0x8b   : > { %2214 = shalt.err (!%p2211_p10)
}
  0x8c   : > { %s2215_s29 = scalar_lea.vmem %s2651_s6, 1024  ;;  %s2403_s25 = smov [#allocation2]  }
  0x8d   : > { %p2216_p5 = scmp.ne.s32.totalorder %s2651_s6, %s2215_s29  ;;  %s2220_s27 = sshll.u32 %s2403_s25, 4  ;;  %s2221_s27 = int_to_ptr.vmem [resolvable:$false] %s2220_s27 }
  0x8e   : > { %s2222_s30 = scalar_lea.vmem %s2221_s27, 2048  ;;  %p2223_p1 = scmp.lt.s32.totalorder %s2651_s6, %s2221_s27 }
  0x8f   : > { %p2218_p7 = pnand %p2216_p5, %p2202_p13  ;;  %p2224_p4 = scmp.lt.s32.totalorder %s2222_s30, %s2215_s29 }
  0x91   : > { %p2219_p11 = pneg %p2218_p7  ;;  %p2225_p8 = por %p2224_p4, %p2223_p1 }
  0x93   : > { %p2226_p12 = pnand %p2225_p8, %p2219_p11 }
  0x95   : > { %2229 = shalt.err (!%p2226_p12)
}
  0x96   : > { %s3032_s23 = smov 4   ;;  %s3033_s26 = smov 64  }
  0x97   : > { %1994 = dma.hbm_to_vmem [thread:$0]  (!%p2657_p9), %s2664_s8, 1024, %s2651_s6, %s2666_s7, %s3033_s26, %s3033_s26, %s3032_s23  }
  0x98   : > { %p3034_p13 = scmp.ne.s32.totalorder %s3021_s21, 0 }
  0x99   : > { %s2700_s20 = sand.u32 (!%p3034_p13), 1, %s2372_s10   ;;  %p3035_p2 = scmp.ne.s32.totalorder (!%p3034_p13), %s3018_s19, 0 }
  0x9a   : > { %372 = sbr.rel (%p3034_p13) target bundleno = 514 (0x202), region = 48  ;;  %s2703_s28 = sshll.u32 (!%p3034_p13), %s2700_s20, 6 }
  0x9b   : > { %s375_s2 = scalar_lea.sflag (!%p3034_p13), [#allocation3], %s2700_s20  ;;  %s2707_s3 = scalar_lea.vmem (!%p3034_p13), [#allocation2], %s2703_s28 }
  0xa1   : > { %2347 = dma.done.wait (%p3035_p2), %s375_s2, 1024  }
  0xa2   : > { %2349 = vsyncadd (%p3035_p2), %s375_s2, 4294966272  ;;  %p3036_p9 = scmp.eq.s32.totalorder %s2500_s17, 0 }
  0xa4   : > { %2351 = dma.done.wait (%p3036_p9), [#allocation6], 2048   ;;  %p3037_p6 = pmov %p3036_p9 }
  0xa6   : > { %2353 = vsyncadd (%p3037_p6), [#allocation6], 4294965248  ;;  %p3038_p0 = pmov %p3037_p6 }
  0xa8   : > { %2355 = dma.done.wait (%p3038_p0), [#allocation9], 1024   ;;  %p3039_p10 = pmov %p3038_p0 }
  0xa9   : > { %v2084_v0 = vld [vmem:[#allocation5] sm:$0xff]   ;;  %v2086_v2 = vld [vmem:[#allocation5 + $0x8] sm:$0xff]   ;;  %v2088_v4 = vld [vmem:[#allocation5 + $0x10] sm:$0xff]   ;;  %s2758_s7 = scalar_lea.vmem [#allocation10], %s2703_s28  ;;  %s2762_s24 = scalar_lea.vmem [#allocation11], %s2703_s28 }
  0xaa   : > { %2357 = vsyncadd (%p3039_p10), [#allocation9], 4294966272  ;;  %v2085_v1 = vld [vmem:[#allocation7] sm:$0xff]   ;;  %1849 = vmatprep.subr.bf16.mxu0 %v2084_v0  ;;  %v2087_v3 = vld [vmem:[#allocation7 + $0x8] sm:$0xff]   ;;  %s3040_s1 = sld [smem:[#allocation20_spill]]  ;;  %s1601_s22 = sshll.u32 %s2380_s12, 4 }
  0xab   : > { %1881 = vmatprep.subr.bf16.mxu1 %v2085_v1  ;;  %1850 = vmatpush3.bf16.msra.mxu0 %v2084_v0  ;;  %v2089_v5 = vld [vmem:[#allocation7 + $0x10] sm:$0xff]   ;;  %v2090_v6 = vld [vmem:[#allocation5 + $0x18] sm:$0xff]   ;;  %v2092_v8 = vld [vmem:[#allocation5 + $0x20] sm:$0xff]   ;;  %s1274_s25 = sshll.u32 %s2758_s7, 4  ;;  %s1292_s30 = sshll.u32 %s2762_s24, 4  ;;  %s2795_s25 = int_to_ptr.vmem [resolvable:$true] %s1274_s25  ;;  %s2801_s30 = int_to_ptr.vmem [resolvable:$true] %s1292_s30 }
  0xac   : > { %1882 = vmatpush3.bf16.msra.mxu1 %v2085_v1  ;;  %1851 = vmatprep.subr.bf16.mxu0 %v2086_v2  ;;  %v2091_v7 = vld [vmem:[#allocation7 + $0x18] sm:$0xff]   ;;  %v2093_v9 = vld [vmem:[#allocation7 + $0x20] sm:$0xff]   ;;  %v2094_v10 = vld [vmem:[#allocation5 + $0x28] sm:$0xff]   ;;  %s1253_s23 = sand.u32 1, %s2500_s17   ;;  %s3042_s8 = sld [smem:[#allocation28_spill]] }
  0xad   : > { %1883 = vmatprep.subr.bf16.mxu1 %v2087_v3  ;;  %v2722_v11 = vld [vmem:[%s2707_s3] sm:$0xff]   ;;  %v2095_v12 = vld [vmem:[#allocation7 + $0x28] sm:$0xff]   ;;  %v2096_v13 = vld [vmem:[#allocation5 + $0x30] sm:$0xff]   ;;  %s1249_s26 = scalar_lea.sflag [#allocation4], %s2700_s20  ;;  %s2230_s2 = scalar_lea.vmem %s2795_s25, 1024 }
  0xae   : > { %1865 = vmatprep.mubr.bf16.mxu0 %v2722_v11  ;;  %1897 = vmatprep.mubr.bf16.mxu1 %v2722_v11  ;;  %v2097_v14 = vld [vmem:[#allocation7 + $0x30] sm:$0xff]   ;;  %v2098_v15 = vld [vmem:[#allocation5 + $0x38] sm:$0xff]   ;;  %v2102_v17 = vld [vmem:[#allocation8] sm:$0xff]   ;;  %p2231_p5 = scmp.ne.s32.totalorder %s2795_s25, %s2230_s2  ;;  %s2404_s21 = smov [#allocation10]  }
  0xaf   : > { %1852 = vmatpush3.bf16.msra.mxu0 %v2086_v2  ;;  %v2099_v16 = vld [vmem:[#allocation7 + $0x38] sm:$0xff]   ;;  %v2727_v18 = vld [vmem:[%s2707_s3 + $0x8] sm:$0xff]   ;;  %v2104_v20 = vld [vmem:[%s2707_s3 + $0x10] sm:$0xff]  }
  0xb0   : > { %1884 = vmatpush3.bf16.msra.mxu1 %v2087_v3  ;;  %1853 = vmatprep.subr.bf16.mxu0 %v2088_v4  ;;  %v2103_v19 = vld [vmem:[#allocation8 + $0x8] sm:$0xff]   ;;  %v2106_v21 = vld [vmem:[#allocation8 + $0x10] sm:$0xff]   ;;  %v2105_v22 = vld [vmem:[%s2707_s3 + $0x18] sm:$0xff]   ;;  %s1602_s29 = sshll.u32 %s3040_s1, 5  ;;  %p2232_p7 = pnand %p2231_p5, %p2632_p3 }
  0xb1   : > { %1885 = vmatprep.subr.bf16.mxu1 %v2089_v5  ;;  %v2107_v23 = vld [vmem:[#allocation8 + $0x18] sm:$0xff]   ;;  %v2108_v24 = vld [vmem:[%s2707_s3 + $0x20] sm:$0xff]   ;;  %v2109_v26 = vld [vmem:[%s2707_s3 + $0x28] sm:$0xff]   ;;  %s1271_s27 = sadd.s32 %s1602_s29, %s1601_s22 }
  0xb2   : > { %v2110_v25 = vld [vmem:[#allocation8 + $0x20] sm:$0xff]   ;;  %v2111_v27 = vld [vmem:[#allocation8 + $0x28] sm:$0xff]   ;;  %v2112_v28 = vld [vmem:[%s2707_s3 + $0x30] sm:$0xff]   ;;  %s2799_s12 = sshll.u32 %s1271_s27, 6  ;;  %s3043_s27 = sld [smem:[#allocation26_spill]] }
  0xb3   : > { %1854 = vmatpush3.bf16.msra.mxu0 %v2088_v4  ;;  %v2114_v29 = vld [vmem:[#allocation8 + $0x30] sm:$0xff]   ;;  %v2113_v30 = vld [vmem:[%s2707_s3 + $0x38] sm:$0xff]   ;;  %v2742_v33 = vld [vmem:[%s2991_s4] ss:$0 sm:$0xff]  ;;  %s3041_s3 = sld [smem:[#allocation27_spill]]  ;;  %s2821_s1 = scalar_lea.hbm %s3042_s8, %s2799_s12 }
  0xb4   : > { %1886 = vmatpush3.bf16.msra.mxu1 %v2089_v5  ;;  %1855 = vmatprep.subr.bf16.mxu0 %v2090_v6  ;;  %v2115_v31 = vld [vmem:[#allocation8 + $0x38] sm:$0xff]   ;;  %v2747_v35 = vld [vmem:[%s2992_s5] ss:$0 sm:$0xff]  ;;  %p2233_p11 = pneg %p2232_p7 }
  0xb5   : > { %1887 = vmatprep.subr.bf16.mxu1 %v2091_v7 }
  0xb7   : > { %1856 = vmatpush3.bf16.msra.mxu0 %v2090_v6 }
  0xb8   : > { %1888 = vmatpush3.bf16.msra.mxu1 %v2091_v7  ;;  %1857 = vmatprep.subr.bf16.mxu0 %v2092_v8 }
  0xb9   : > { %1889 = vmatprep.subr.bf16.mxu1 %v2093_v9  ;;  %s2814_s19 = scalar_lea.hbm %s3041_s3, %s2799_s12 }
  0xbb   : > { %1858 = vmatpush3.bf16.msra.mxu0 %v2092_v8 }
  0xbc   : > { %1890 = vmatpush3.bf16.msra.mxu1 %v2093_v9  ;;  %1859 = vmatprep.subr.bf16.mxu0 %v2094_v10 }
  0xbd   : > { %1891 = vmatprep.subr.bf16.mxu1 %v2095_v12 }
  0xbf   : > { %1860 = vmatpush3.bf16.msra.mxu0 %v2094_v10 }
  0xc0   : > { %1892 = vmatpush3.bf16.msra.mxu1 %v2095_v12  ;;  %1861 = vmatprep.subr.bf16.mxu0 %v2096_v13 }
  0xc1   : > { %1893 = vmatprep.subr.bf16.mxu1 %v2097_v14 }
  0xc3   : > { %1862 = vmatpush3.bf16.msra.mxu0 %v2096_v13 }
  0xc4   : > { %1894 = vmatpush3.bf16.msra.mxu1 %v2097_v14  ;;  %1863 = vmatprep.subr.bf16.mxu0 %v2098_v15 }
  0xc5   : > { %1895 = vmatprep.subr.bf16.mxu1 %v2099_v16 }
  0xc7   : > { %1864 = vmatpush3.bf16.msra.mxu0 %v2098_v15 }
  0xc8   : > { %1896 = vmatpush3.bf16.msra.mxu1 %v2099_v16  ;;  %1913 = vmatprep.subr.bf16.mxu0 %v2102_v17 }
  0xc9   : > { %1945 = vmatprep.subr.bf16.mxu1 %v2102_v17 }
  0xca   : > { %1866 = vmatmul.mubr.bf16.vlgmr.msra.gmra.mrb[0].mxu0 %v2727_v18 }
  0xcb   : > { %1898 = vmatmul.mubr.bf16.vlgmr.msra.gmra.mrb[0].mxu1 %v2727_v18  ;;  %1914 = vmatpush3.bf16.msra.mxu0 %v2102_v17 }
  0xcc   : > { %1953 = vmatpush3.bf16.msra.mxu1 %v2102_v17  ;;  %1915 = vmatprep.subr.bf16.mxu0 %v2103_v19 }
  0xcd   : > { %1946 = vmatprep.subr.bf16.mxu1 %v2103_v19  ;;  %1869 = vmatprep.mubr.bf16.mxu0 %v2104_v20 }
  0xce   : > { %1901 = vmatprep.mubr.bf16.mxu1 %v2104_v20 }
  0xcf   : > { %1916 = vmatpush3.bf16.msra.mxu0 %v2103_v19 }
  0xd0   : > { %1954 = vmatpush3.bf16.msra.mxu1 %v2103_v19  ;;  %1917 = vmatprep.subr.bf16.mxu0 %v2106_v21 }
  0xd1   : > { %1947 = vmatprep.subr.bf16.mxu1 %v2106_v21 }
  0xd2   : > { %1870 = vmatmul.mubr.bf16.gmra.mrb[4].mxu0 %v2105_v22 }
  0xd3   : > { %1902 = vmatmul.mubr.bf16.gmra.mrb[4].mxu1 %v2105_v22  ;;  %1918 = vmatpush3.bf16.msra.mxu0 %v2106_v21 }
  0xd4   : > { %1955 = vmatpush3.bf16.msra.mxu1 %v2106_v21  ;;  %1919 = vmatprep.subr.bf16.mxu0 %v2107_v23 }
  0xd5   : > { %1948 = vmatprep.subr.bf16.mxu1 %v2107_v23  ;;  %1873 = vmatprep.mubr.bf16.mxu0 %v2108_v24 }
  0xd6   : > { %1905 = vmatprep.mubr.bf16.mxu1 %v2108_v24 }
  0xd7   : > { %1920 = vmatpush3.bf16.msra.mxu0 %v2107_v23 }
  0xd8   : > { %1956 = vmatpush3.bf16.msra.mxu1 %v2107_v23  ;;  %1921 = vmatprep.subr.bf16.mxu0 %v2110_v25 }
  0xd9   : > { %1949 = vmatprep.subr.bf16.mxu1 %v2110_v25 }
  0xda   : > { %1874 = vmatmul.mubr.bf16.gmra.mrb[8].mxu0 %v2109_v26 }
  0xdb   : > { %1906 = vmatmul.mubr.bf16.gmra.mrb[8].mxu1 %v2109_v26  ;;  %1922 = vmatpush3.bf16.msra.mxu0 %v2110_v25 }
  0xdc   : > { %1957 = vmatpush3.bf16.msra.mxu1 %v2110_v25  ;;  %1923 = vmatprep.subr.bf16.mxu0 %v2111_v27 }
  0xdd   : > { %1950 = vmatprep.subr.bf16.mxu1 %v2111_v27  ;;  %1877 = vmatprep.mubr.bf16.mxu0 %v2112_v28 }
  0xde   : > { %1909 = vmatprep.mubr.bf16.mxu1 %v2112_v28 }
  0xdf   : > { %1924 = vmatpush3.bf16.msra.mxu0 %v2111_v27 }
  0xe0   : > { %1958 = vmatpush3.bf16.msra.mxu1 %v2111_v27  ;;  %1925 = vmatprep.subr.bf16.mxu0 %v2114_v29 }
  0xe1   : > { %1951 = vmatprep.subr.bf16.mxu1 %v2114_v29 }
  0xe2   : > { %1878 = vmatmul.mubr.bf16.gmra.mrb[12].mxu0 %v2113_v30 }
  0xe3   : > { %1910 = vmatmul.mubr.bf16.gmra.mrb[12].mxu1 %v2113_v30  ;;  %1926 = vmatpush3.bf16.msra.mxu0 %v2114_v29 }
  0xe4   : > { %1959 = vmatpush3.bf16.msra.mxu1 %v2114_v29  ;;  %1927 = vmatprep.subr.bf16.mxu0 %v2115_v31 }
  0xe5   : > { %1952 = vmatprep.subr.bf16.mxu1 %v2115_v31  ;;  %1929 = vmatprep.mubr.bf16.mxu0 %v2722_v11 }
  0xe6   : > { %1937 = vmatprep.mubr.bf16.mxu1 %v2108_v24 }
  0xe7   : > { %1928 = vmatpush3.bf16.msra.mxu0 %v2115_v31 }
  0xe8   : > { %1960 = vmatpush3.bf16.msra.mxu1 %v2115_v31 }
  0xea   : > { %1930 = vmatmul.mubr.bf16.vlgmr.msra.gmra.mrb[16].mxu0 %v2727_v18 }
  0xeb   : > { %1938 = vmatmul.mubr.bf16.vlgmr.msra.gmra.mrb[16].mxu1 %v2109_v26  ;;  %1933 = vmatprep.mubr.bf16.mxu0 %v2104_v20 }
  0xec   : > { %1941 = vmatprep.mubr.bf16.mxu1 %v2112_v28 }
  0xf2   : > { %1934 = vmatmul.mubr.bf16.gmra.mrb[20].mxu0 %v2105_v22 }
  0xf3   : > { %1942 = vmatmul.mubr.bf16.gmra.mrb[20].mxu1 %v2113_v30 }
 0x19d   : > { %v1867_v32 = vpop.f32.mrb[0].mxu0 }
 0x19e   : > { %v1899_v34 = vpop.f32.mrb[0].mxu1  ;;  %v609_v36 = vpop.f32.mrb[1].mxu0  ;;  %v618_v39 = vadd.f32 %v1867_v32, %v2742_v33 }
 0x19f   : > { %v857_v37 = vpop.f32.mrb[1].mxu1  ;;  %v1868_v38 = vpop.f32.mrb[2].mxu0  ;;  %v866_v43 = vadd.f32 %v1899_v34, %v2747_v35  ;;  %v610_v44 = vadd.f32 %v2742_v33, %v609_v36 }
 0x1a0   : > { %v621_v40 = vadd.f32 %v1868_v38, %v2742_v33  ;;  %v1900_v41 = vpop.f32.mrb[2].mxu1  ;;  %v612_v42 = vpop.f32.mrb[3].mxu0  ;;  %v858_v48 = vadd.f32 %v2747_v35, %v857_v37 }
 0x1a1   : > { %v869_v45 = vadd.f32 %v1900_v41, %v2747_v35  ;;  %v613_v46 = vadd.f32 %v2742_v33, %v612_v42  ;;  %v860_v47 = vpop.f32.mrb[3].mxu1 }
 0x1a2   : > { %v1668_v49 = vpack.c.bf16 %v621_v40, %v618_v39  ;;  %v861_v50 = vadd.f32 %v2747_v35, %v860_v47 }
 0x1a3   : > { %v1708_v51 = vpack.c.bf16 %v869_v45, %v866_v43  ;;  %v1663_v52 = vpack.c.bf16 %v613_v46, %v610_v44 }
 0x1a4   : > { %1780 = vst [vmem:[%s2758_s7 + $0x8] sm:$0xff] %v1668_v49   ;;  %v1703_v53 = vpack.c.bf16 %v861_v50, %v858_v48 }
 0x1a5   : > { %1787 = vst [vmem:[%s2762_s24 + $0x8] sm:$0xff] %v1708_v51   ;;  %1664 = vst [vmem:[%s2758_s7] sm:$0xff] %v1663_v52   ;;  %v1871_v54 = vpop.f32.mrb[4].mxu0  ;;  %v2830_v51 = vld [vmem:[%s3043_s27] ss:$0 sm:$0xff] }
 0x1a6   : > { %1704 = vst [vmem:[%s2762_s24] sm:$0xff] %v1703_v53   ;;  %v1903_v55 = vpop.f32.mrb[4].mxu1  ;;  %v625_v56 = vpop.f32.mrb[5].mxu0  ;;  %v634_v59 = vadd.f32 %v1871_v54, %v2742_v33 }
 0x1a7   : > { %v873_v57 = vpop.f32.mrb[5].mxu1  ;;  %v1872_v58 = vpop.f32.mrb[6].mxu0  ;;  %v882_v63 = vadd.f32 %v1903_v55, %v2747_v35  ;;  %v626_v0 = vadd.f32 %v2742_v33, %v625_v56 }
 0x1a8   : > { %v637_v60 = vadd.f32 %v1872_v58, %v2742_v33  ;;  %v1904_v61 = vpop.f32.mrb[6].mxu1  ;;  %v628_v62 = vpop.f32.mrb[7].mxu0  ;;  %v874_v4 = vadd.f32 %v2747_v35, %v873_v57 }
 0x1a9   : > { %v885_v1 = vadd.f32 %v1904_v61, %v2747_v35  ;;  %v629_v2 = vadd.f32 %v2742_v33, %v628_v62  ;;  %v876_v3 = vpop.f32.mrb[7].mxu1 }
 0x1aa   : > { %v1678_v5 = vpack.c.bf16 %v637_v60, %v634_v59  ;;  %v877_v6 = vadd.f32 %v2747_v35, %v876_v3 }
 0x1ab   : > { %v1718_v7 = vpack.c.bf16 %v885_v1, %v882_v63  ;;  %v1673_v8 = vpack.c.bf16 %v629_v2, %v626_v0 }
 0x1ac   : > { %1782 = vst [vmem:[%s2758_s7 + $0x18] sm:$0xff] %v1678_v5   ;;  %v1713_v9 = vpack.c.bf16 %v877_v6, %v874_v4 }
 0x1ad   : > { %1789 = vst [vmem:[%s2762_s24 + $0x18] sm:$0xff] %v1718_v7   ;;  %1781 = vst [vmem:[%s2758_s7 + $0x10] sm:$0xff] %v1673_v8   ;;  %v1875_v10 = vpop.f32.mrb[8].mxu0 }
 0x1ae   : > { %1788 = vst [vmem:[%s2762_s24 + $0x10] sm:$0xff] %v1713_v9   ;;  %v1907_v11 = vpop.f32.mrb[8].mxu1  ;;  %v641_v12 = vpop.f32.mrb[9].mxu0  ;;  %v650_v15 = vadd.f32 %v1875_v10, %v2742_v33 }
 0x1af   : > { %v889_v13 = vpop.f32.mrb[9].mxu1  ;;  %v1876_v14 = vpop.f32.mrb[10].mxu0  ;;  %v898_v19 = vadd.f32 %v1907_v11, %v2747_v35  ;;  %v642_v20 = vadd.f32 %v2742_v33, %v641_v12 }
 0x1b0   : > { %v653_v16 = vadd.f32 %v1876_v14, %v2742_v33  ;;  %v1908_v17 = vpop.f32.mrb[10].mxu1  ;;  %v644_v18 = vpop.f32.mrb[11].mxu0  ;;  %v890_v24 = vadd.f32 %v2747_v35, %v889_v13 }
 0x1b1   : > { %v901_v21 = vadd.f32 %v1908_v17, %v2747_v35  ;;  %v645_v22 = vadd.f32 %v2742_v33, %v644_v18  ;;  %v892_v23 = vpop.f32.mrb[11].mxu1 }
 0x1b2   : > { %v1688_v25 = vpack.c.bf16 %v653_v16, %v650_v15  ;;  %v893_v26 = vadd.f32 %v2747_v35, %v892_v23 }
 0x1b3   : > { %v1728_v27 = vpack.c.bf16 %v901_v21, %v898_v19  ;;  %v1683_v28 = vpack.c.bf16 %v645_v22, %v642_v20 }
 0x1b4   : > { %1784 = vst [vmem:[%s2758_s7 + $0x28] sm:$0xff] %v1688_v25   ;;  %v1723_v29 = vpack.c.bf16 %v893_v26, %v890_v24 }
 0x1b5   : > { %1791 = vst [vmem:[%s2762_s24 + $0x28] sm:$0xff] %v1728_v27   ;;  %1783 = vst [vmem:[%s2758_s7 + $0x20] sm:$0xff] %v1683_v28   ;;  %v1879_v30 = vpop.f32.mrb[12].mxu0 }
 0x1b6   : > { %1790 = vst [vmem:[%s2762_s24 + $0x20] sm:$0xff] %v1723_v29   ;;  %v1911_v31 = vpop.f32.mrb[12].mxu1  ;;  %v657_v32 = vpop.f32.mrb[13].mxu0  ;;  %v666_v37 = vadd.f32 %v1879_v30, %v2742_v33 }
 0x1b7   : > { %v905_v34 = vpop.f32.mrb[13].mxu1  ;;  %v1880_v36 = vpop.f32.mrb[14].mxu0  ;;  %v914_v41 = vadd.f32 %v1911_v31, %v2747_v35  ;;  %v658_v42 = vadd.f32 %v2742_v33, %v657_v32 }
 0x1b8   : > { %v669_v38 = vadd.f32 %v1880_v36, %v2742_v33  ;;  %v1912_v39 = vpop.f32.mrb[14].mxu1  ;;  %v660_v40 = vpop.f32.mrb[15].mxu0  ;;  %v906_v46 = vadd.f32 %v2747_v35, %v905_v34 }
 0x1b9   : > { %v917_v43 = vadd.f32 %v1912_v39, %v2747_v35  ;;  %v661_v44 = vadd.f32 %v2742_v33, %v660_v40  ;;  %v908_v45 = vpop.f32.mrb[15].mxu1 }
 0x1ba   : > { %v1698_v47 = vpack.c.bf16 %v669_v38, %v666_v37  ;;  %v909_v48 = vadd.f32 %v2747_v35, %v908_v45 }
 0x1bb   : > { %v1738_v49 = vpack.c.bf16 %v917_v43, %v914_v41  ;;  %v1693_v50 = vpack.c.bf16 %v661_v44, %v658_v42 }
 0x1bc   : > { %1786 = vst [vmem:[%s2758_s7 + $0x38] sm:$0xff] %v1698_v47   ;;  %v1733_v33 = vpack.c.bf16 %v909_v48, %v906_v46 }
 0x1bd   : > { %1793 = vst [vmem:[%s2762_s24 + $0x38] sm:$0xff] %v1738_v49   ;;  %1785 = vst [vmem:[%s2758_s7 + $0x30] sm:$0xff] %v1693_v50   ;;  %v2825_v35 = vpop.f32.mrb[16].mxu0  ;;  %s2234_s7 = sshll.u32 %s2404_s21, 4  ;;  %s2235_s7 = int_to_ptr.vmem [resolvable:$false] %s2234_s7 }
 0x1be   : > { %1792 = vst [vmem:[%s2762_s24 + $0x30] sm:$0xff] %v1733_v33   ;;  %v2833_v52 = vpop.f32.mrb[16].mxu1  ;;  %v2835_v53 = vpop.f32.mrb[17].mxu0  ;;  %s2236_s6 = scalar_lea.vmem %s2235_s7, 2048  ;;  %p2237_p1 = scmp.lt.s32.totalorder %s2795_s25, %s2235_s7 }
 0x1bf   : > { %p2238_p4 = scmp.lt.s32.totalorder %s2236_s6, %s2230_s2 }
 0x1c1   : > { %p2239_p8 = por %p2238_p4, %p2237_p1 }
 0x1c3   : > { %p2240_p12 = pnand %p2239_p8, %p2233_p11 }
 0x1c5   : > { %2243 = shalt.err (!%p2240_p12)
}
 0x1c6   : > { %s2244_s24 = scalar_lea.hbm %s2814_s19, 1024  ;;  %s2248_s27 = scalar_lea.hbm %s3041_s3, 4096 }
 0x1c7   : > { %p2245_p13 = scmp.ne.s32.totalorder %s2814_s19, %s2244_s24  ;;  %p2249_p6 = scmp.lt.u32.totalorder %s2814_s19, %s3041_s3 }
 0x1c8   : > { %p2250_p0 = scmp.lt.u32.totalorder %s2248_s27, %s2244_s24  ;;  %p2252_p5 = scmp.lt.u32.totalorder %s2244_s24, %s2814_s19 }
 0x1c9   : > { %p2246_p2 = pnand %p2245_p13, %p2632_p3 }
 0x1ca   : > { %p2251_p10 = por %p2250_p0, %p2249_p6 }
 0x1cb   : > { %p2247_p9 = pneg %p2246_p2 }
 0x1cc   : > { %p2253_p7 = por %p2252_p5, %p2251_p10 }
 0x1ce   : > { %p2254_p11 = pnand %p2253_p7, %p2247_p9 }
 0x1d0   : > { %2257 = shalt.err (!%p2254_p11)
}
 0x1d1   : > { %s2405_s2 = smov 64   ;;  %s2406_s6 = smov 4   ;;  %v1137_v54 = vpop.f32.mrb[17].mxu1  ;;  %v1932_v55 = vpop.f32.mrb[18].mxu0 }
 0x1d2   : > { %1975 = dma.vmem_to_hbm [thread:$0]  (%p2632_p3), %s2795_s25, 1024, %s2814_s19, %s1249_s26, %s2405_s2, %s2405_s2, %s2406_s6  }
 0x1d3   : > { %s2866_s24 = scalar_lea.sflag [#allocation12], %s1253_s23  ;;  %s2258_s22 = scalar_lea.vmem %s2801_s30, 1024 }
 0x1d4   : > { %p2259_p1 = scmp.ne.s32.totalorder %s2801_s30, %s2258_s22  ;;  %s2407_s29 = smov [#allocation11]  }
 0x1d5   : > { %s2262_s27 = sshll.u32 %s2407_s29, 4  ;;  %s2263_s27 = int_to_ptr.vmem [resolvable:$false] %s2262_s27 }
 0x1d6   : > { %p2260_p4 = pnand %p2259_p1, %p2632_p3  ;;  %s2264_s21 = scalar_lea.vmem %s2263_s27, 2048 }
 0x1d7   : > { %p2265_p12 = scmp.lt.s32.totalorder %s2801_s30, %s2263_s27  ;;  %p2266_p13 = scmp.lt.s32.totalorder %s2264_s21, %s2258_s22 }
 0x1d8   : > { %p2261_p8 = pneg %p2260_p4 }
 0x1d9   : > { %p2267_p2 = por %p2266_p13, %p2265_p12 }
 0x1db   : > { %p2268_p9 = pnand %p2267_p2, %p2261_p8 }
 0x1dd   : > { %2271 = shalt.err (!%p2268_p9)
}
 0x1de   : > { %s2272_s17 = scalar_lea.hbm %s2821_s1, 1024  ;;  %s2276_s23 = scalar_lea.hbm %s3042_s8, 4096 }
 0x1df   : > { %p2273_p6 = scmp.ne.s32.totalorder %s2821_s1, %s2272_s17  ;;  %p2277_p5 = scmp.lt.u32.totalorder %s2821_s1, %s3042_s8 }
 0x1e0   : > { %p2278_p7 = scmp.lt.u32.totalorder %s2276_s23, %s2272_s17  ;;  %p2280_p1 = scmp.lt.u32.totalorder %s2272_s17, %s2821_s1 }
 0x1e1   : > { %p2274_p0 = pnand %p2273_p6, %p2632_p3 }
 0x1e2   : > { %p2279_p11 = por %p2278_p7, %p2277_p5 }
 0x1e3   : > { %p2275_p10 = pneg %p2274_p0 }
 0x1e4   : > { %p2281_p4 = por %p2280_p1, %p2279_p11 }
 0x1e6   : > { %p2282_p8 = pnand %p2281_p4, %p2275_p10 }
 0x1e8   : > { %2285 = shalt.err (!%p2282_p8)
}
 0x1e9   : > { %1976 = dma.vmem_to_hbm [thread:$0]  (%p2632_p3), %s2801_s30, 1024, %s2821_s1, %s2866_s24, %s2405_s2, %s2405_s2, %s2406_s6   ;;  %v1114_v56 = vadd.f32 %v2825_v35, %v2830_v51  ;;  %v1117_v57 = vadd.f32 %v1932_v55, %v2830_v51  ;;  %v1940_v58 = vpop.f32.mrb[18].mxu1  ;;  %v1108_v59 = vpop.f32.mrb[19].mxu0  ;;  %v1146_v60 = vadd.f32 %v2833_v52, %v2830_v51  ;;  %v1106_v61 = vadd.f32 %v2830_v51, %v2835_v53 }
 0x1ea   : > { %v1149_v62 = vadd.f32 %v1940_v58, %v2830_v51  ;;  %v1109_v63 = vadd.f32 %v2830_v51, %v1108_v59  ;;  %v1140_v0 = vpop.f32.mrb[19].mxu1  ;;  %v1138_v1 = vadd.f32 %v2830_v51, %v1137_v54  ;;  %s2905_s30 = scalar_lea.vmem [#allocation13], %s2703_s28  ;;  %v1935_v7 = vpop.f32.mrb[20].mxu0  ;;  %s3044_s22 = sld [smem:[#allocation29_spill]] }
 0x1eb   : > { %v1748_v2 = vpack.c.bf16 %v1117_v57, %v1114_v56  ;;  %v1141_v3 = vadd.f32 %v2830_v51, %v1140_v0  ;;  %v1943_v8 = vpop.f32.mrb[20].mxu1  ;;  %v1121_v9 = vpop.f32.mrb[21].mxu0  ;;  %v1130_v12 = vadd.f32 %v1935_v7, %v2830_v51  ;;  %s1310_s28 = sshll.u32 %s2905_s30, 4  ;;  %s2408_s21 = smov [#allocation13]   ;;  %s2920_s28 = int_to_ptr.vmem [resolvable:$true] %s1310_s28 }
 0x1ec   : > { %v1768_v4 = vpack.c.bf16 %v1149_v62, %v1146_v60  ;;  %v1743_v5 = vpack.c.bf16 %v1109_v63, %v1106_v61  ;;  %v1153_v10 = vpop.f32.mrb[21].mxu1  ;;  %v1936_v11 = vpop.f32.mrb[22].mxu0  ;;  %v1162_v16 = vadd.f32 %v1943_v8, %v2830_v51  ;;  %v1122_v17 = vadd.f32 %v2830_v51, %v1121_v9  ;;  %s2286_s27 = scalar_lea.vmem %s2920_s28, 1024  ;;  %s2290_s17 = sshll.u32 %s2408_s21, 4  ;;  %s2291_s17 = int_to_ptr.vmem [resolvable:$false] %s2290_s17 }
 0x1ed   : > { %1794 = vst [vmem:[%s2905_s30 + $0x8] sm:$0xff] %v1748_v2   ;;  %v1763_v6 = vpack.c.bf16 %v1141_v3, %v1138_v1  ;;  %v1133_v13 = vadd.f32 %v1936_v11, %v2830_v51  ;;  %v1944_v14 = vpop.f32.mrb[22].mxu1  ;;  %v1124_v15 = vpop.f32.mrb[23].mxu0  ;;  %v1154_v21 = vadd.f32 %v2830_v51, %v1153_v10  ;;  %p2287_p12 = scmp.ne.s32.totalorder %s2920_s28, %s2286_s27  ;;  %s2292_s20 = scalar_lea.vmem %s2291_s17, 2048 }
 0x1ee   : > { %1798 = vst [vmem:[%s2905_s30 + $0x28] sm:$0xff] %v1768_v4   ;;  %1744 = vst [vmem:[%s2905_s30] sm:$0xff] %v1743_v5   ;;  %v1165_v18 = vadd.f32 %v1944_v14, %v2830_v51  ;;  %v1125_v19 = vadd.f32 %v2830_v51, %v1124_v15  ;;  %v1156_v20 = vpop.f32.mrb[23].mxu1  ;;  %p2293_p9 = scmp.lt.s32.totalorder %s2920_s28, %s2291_s17  ;;  %p2294_p6 = scmp.lt.s32.totalorder %s2292_s20, %s2286_s27 }
 0x1ef   : > { %1797 = vst [vmem:[%s2905_s30 + $0x20] sm:$0xff] %v1763_v6   ;;  %v1758_v22 = vpack.c.bf16 %v1133_v13, %v1130_v12  ;;  %v1157_v23 = vadd.f32 %v2830_v51, %v1156_v20  ;;  %p2288_p13 = pnand %p2287_p12, %p2632_p3 }
 0x1f0   : > { %v1778_v24 = vpack.c.bf16 %v1165_v18, %v1162_v16  ;;  %v1753_v25 = vpack.c.bf16 %v1125_v19, %v1122_v17  ;;  %s2927_s29 = scalar_lea.hbm %s3044_s22, %s2799_s12  ;;  %p2295_p0 = por %p2294_p6, %p2293_p9 }
 0x1f1   : > { %1796 = vst [vmem:[%s2905_s30 + $0x18] sm:$0xff] %v1758_v22   ;;  %v1773_v26 = vpack.c.bf16 %v1157_v23, %v1154_v21  ;;  %p2289_p2 = pneg %p2288_p13 }
 0x1f2   : > { %1800 = vst [vmem:[%s2905_s30 + $0x38] sm:$0xff] %v1778_v24   ;;  %1795 = vst [vmem:[%s2905_s30 + $0x10] sm:$0xff] %v1753_v25  }
 0x1f3   : > { %1799 = vst [vmem:[%s2905_s30 + $0x30] sm:$0xff] %v1773_v26   ;;  %p2296_p10 = pnand %p2295_p0, %p2289_p2 }
 0x1f5   : > { %2299 = shalt.err (!%p2296_p10)
}
 0x1f6   : > { %s2300_s12 = scalar_lea.hbm %s2927_s29, 1024  ;;  %s2304_s19 = scalar_lea.hbm %s3044_s22, 4096 }
 0x1f7   : > { %p2301_p5 = scmp.ne.s32.totalorder %s2927_s29, %s2300_s12  ;;  %p2305_p1 = scmp.lt.u32.totalorder %s2927_s29, %s3044_s22 }
 0x1f8   : > { %p2306_p4 = scmp.lt.u32.totalorder %s2304_s19, %s2300_s12  ;;  %p2308_p12 = scmp.lt.u32.totalorder %s2300_s12, %s2927_s29 }
 0x1f9   : > { %p2302_p7 = pnand %p2301_p5, %p2632_p3 }
 0x1fa   : > { %p2307_p8 = por %p2306_p4, %p2305_p1 }
 0x1fb   : > { %p2303_p11 = pneg %p2302_p7 }
 0x1fc   : > { %p2309_p13 = por %p2308_p12, %p2307_p8 }
 0x1fe   : > { %p2310_p2 = pnand %p2309_p13, %p2303_p11 }
 0x200   : > { %2313 = shalt.err (!%p2310_p2)
}
 0x201   : > { %1977 = dma.vmem_to_hbm [thread:$0]  (%p2632_p3), %s2920_s28, 1024, %s2927_s29, %s2866_s24, %s2405_s2, %s2405_s2, %s2406_s6  }
 0x202 PF: > { %s3045_s1 = sld [smem:[#allocation19_spill]]  ;;  %s3046_s7 = sld [smem:[#allocation21_spill]] }
 0x203   : > { %p2012_p9 = scmp.ge.s32.totalorder %s2396_s16, 2 }
 0x208   : > { %s1325_s27 = sand.u32 1, %s3045_s1   ;;  %p3047_p6 = scmp.ne.s32.totalorder %s3046_s7, 0 }
 0x209   : > { %s1326_s21 = scalar_lea.sflag [#allocation4], %s1325_s27 }
 0x20a   : > { %p1996_p0 = pnand %p2012_p9, %p3047_p6 }
 0x20c   : > { %2359 = dma.done.wait (!%p1996_p0), %s1326_s21, 1024  }
 0x20d   : > { %2361 = vsyncadd (!%p1996_p0), %s1326_s21, 4294966272  ;;  %s3048_s13 = sadd.s32 4294967294, %s2396_s16  }
 0x20e   : > { %s1334_s17 = sand.u32 1, %s3048_s13  }
 0x20f   : > { %s1335_s20 = scalar_lea.sflag [#allocation12], %s1334_s17 }
 0x210   : > { %2363 = dma.done.wait (!%p1996_p0), %s1335_s20, 2048  }
 0x211   : > { %2365 = vsyncadd (!%p1996_p0), %s1335_s20, 4294965248  ;;  %s31_s16 = sadd.s32 1, %s2396_s16   ;;  %s3049_s2 = sld [smem:[#allocation22_spill]] }
 0x212   : > { %p28_p3 = scmp.ge.s32.totalorder %s31_s16, 6   ;;  %s3050_s30 = smov %s2372_s10 }
 0x213   : > { %s3051_s10 = smov %s2376_s11  ;;  %s3052_s11 = smov %s2649_s18 }
 0x214   : > { %s3053_s12 = smov %s2388_s14  ;;  %s3054_s13 = smov %s2392_s15 }
 0x215   : > { %s3055_s14 = smov %s3058_s9  ;;  %30 = sbr.rel (!%p28_p3) target bundleno = 19 (0x13), region = 137 }
 0x217   : > { %s3056_s15 = smov %s3049_s2 }
 0x21c   :  { %1349 = vsyncpa [#allocation3], 1 }
 0x21d   :  { %1351 = vsyncpa [#allocation3 + $0x1], 1 }
 0x21e   :  { %1352 = vsyncpa [#allocation6], 1 }
 0x21f   :  { %1353 = vsyncpa [#allocation9], 1 }
 0x220   :  { %1354 = vsyncpa [#allocation4], 1 }
 0x221   :  { %1356 = vsyncpa [#allocation4 + $0x1], 1 }
 0x222   :  { %1357 = vsyncpa [#allocation12], 1 }
 0x223   :  { %1359 = vsyncpa [#allocation12 + $0x1], 1 }

</bundles_post_ra>
